<compile_context>
chip_gen: v5e
topology: v5e:2x2
jax: 0.10.0
libtpu: 0.0.40
codegen_flags: <defaults>
</compile_context>

<pallas_src>
import functools

import jax
import jax.numpy as jnp
from jax.experimental import pallas as pl
from jax.experimental.pallas import tpu as pltpu


def _round_up(x, m):
    return ((x + m - 1) // m) * m


def _gfm_kernel(x_ref, c_ref, wc_ref, wss_ref, b_ref, o_ref, *, base_nf):
    # x_ref:   (in_nf,    TILE_HW)   spatial tile of x (channels in sublanes)
    # c_ref:   (cond_nf,  TILE_HW)   spatial tile of cond
    # wc_ref:  (base_nf,  in_nf)     conv weight (torch OIHW squeezed)
    # wss_ref: (2*base_nf, cond_nf)  [scale_w ; shift_w] fused
    # b_ref:   (3*base_nf, 1)        [conv_b ; scale_b + 1 ; shift_b]
    # o_ref:   (base_nf,  TILE_HW)
    feat = jnp.dot(wc_ref[...], x_ref[...], preferred_element_type=jnp.float32)
    feat = feat + b_ref[0:base_nf, :]

    ss = jnp.dot(wss_ref[...], c_ref[...], preferred_element_type=jnp.float32)
    scale = ss[0:base_nf, :] + b_ref[base_nf:2 * base_nf, :]      # includes +1
    shift = ss[base_nf:2 * base_nf, :] + b_ref[2 * base_nf:3 * base_nf, :]

    out = feat * scale + shift          # == feat*scale0 + shift + feat
    o_ref[...] = jnp.maximum(out, 0.0).astype(o_ref.dtype)


def gfm_forward(x_nchw, cond_nchw, params, *, tile_hw=2048):
    """x_nchw: (N, in_nf, H, W), cond_nchw: (N, cond_nf, H, W) -> (N, base_nf, H, W)."""
    wc, bc = params["conv_w"], params["conv_b"]        # (base_nf, in_nf), (base_nf,)
    ws, bs = params["scale_w"], params["scale_b"]      # (base_nf, cond_nf), (base_nf,)
    wsh, bsh = params["shift_w"], params["shift_b"]    # (base_nf, cond_nf), (base_nf,)

    N, in_nf, H, W = x_nchw.shape
    Nc, cond_nf, Hc, Wc_ = cond_nchw.shape
    assert (N, H, W) == (Nc, Hc, Wc_), "x and cond must share batch/spatial dims"
    base_nf = wc.shape[0]

    HW = H * W
    # Tile is a multiple of 128 lanes (or covers the whole padded row-span).
    tile_hw = int(min(tile_hw, _round_up(HW, 128)))
    hw_pad = _round_up(HW, tile_hw)

    # NCHW viewed as (N, C, H*W): pure reshape, no transpose.
    x3 = x_nchw.reshape(N, in_nf, HW)
    c3 = cond_nchw.reshape(N, cond_nf, HW)
    if hw_pad != HW:
        pad = hw_pad - HW
        x3 = jnp.pad(x3, ((0, 0), (0, 0), (0, pad)))
        c3 = jnp.pad(c3, ((0, 0), (0, 0), (0, pad)))

    # Fuse scale/shift weights; fold the residual into the scale bias; pack biases.
    w_ss = jnp.concatenate([ws, wsh], axis=0)                       # (2*base_nf, cond_nf)
    b_all = jnp.concatenate([bc, bs + 1.0, bsh], axis=0).reshape(3 * base_nf, 1)

    grid = (N, hw_pad // tile_hw)
    kern = functools.partial(_gfm_kernel, base_nf=base_nf)

    out3 = pl.pallas_call(
        kern,
        out_shape=jax.ShapeDtypeStruct((N, base_nf, hw_pad), x_nchw.dtype),
        grid_spec=pltpu.PrefetchScalarGridSpec(
            num_scalar_prefetch=0,
            grid=grid,
            in_specs=[
                pl.BlockSpec((None, in_nf, tile_hw), lambda n, s: (n, 0, s)),
                pl.BlockSpec((None, cond_nf, tile_hw), lambda n, s: (n, 0, s)),
                pl.BlockSpec((base_nf, in_nf), lambda n, s: (0, 0)),        # resident
                pl.BlockSpec((2 * base_nf, cond_nf), lambda n, s: (0, 0)),  # resident
                pl.BlockSpec((3 * base_nf, 1), lambda n, s: (0, 0)),        # resident
            ],
            out_specs=pl.BlockSpec((None, base_nf, tile_hw), lambda n, s: (n, 0, s)),
        ),
        compiler_params=pltpu.CompilerParams(
            dimension_semantics=("parallel", "parallel")),
    )(x3, c3, wc, w_ss, b_all)

    # Drop spatial padding; output is already channel-major NCHW.
    return out3[:, :, :HW].reshape(N, base_nf, H, W)


def init_gfm_params(key, cond_nf, in_nf, base_nf):
    """Deterministic synthetic params. Weights stored as (out, in), i.e. torch
    Conv2d 1x1 weight (out, in, 1, 1) squeezed; biases as (out,)."""
    ks = jax.random.split(key, 6)

    def w(k, fan_out, fan_in):
        return (jax.random.normal(k, (fan_out, fan_in), jnp.float32)
                / jnp.sqrt(jnp.float32(fan_in)))

    return {
        "conv_w":  w(ks[0], base_nf, in_nf),
        "conv_b":  0.01 * jax.random.normal(ks[1], (base_nf,), jnp.float32),
        "scale_w": w(ks[2], base_nf, cond_nf),
        "scale_b": 0.01 * jax.random.normal(ks[3], (base_nf,), jnp.float32),
        "shift_w": w(ks[4], base_nf, cond_nf),
        "shift_b": 0.01 * jax.random.normal(ks[5], (base_nf,), jnp.float32),
    }


def gfm_reference(x_nchw, cond_nchw, params):
    """Pure-JAX reference matching the PyTorch forward (1x1 convs == einsum)."""
    feat = (jnp.einsum("nchw,oc->nohw", x_nchw, params["conv_w"])
            + params["conv_b"][None, :, None, None])
    scale = (jnp.einsum("nchw,oc->nohw", cond_nchw, params["scale_w"])
             + params["scale_b"][None, :, None, None])
    shift = (jnp.einsum("nchw,oc->nohw", cond_nchw, params["shift_w"])
             + params["shift_b"][None, :, None, None])
    return jax.nn.relu(feat * scale + shift + feat)


if __name__ == "__main__":
    # Small shapes consistent with the module: batch=2, in_nf=4, cond_nf=4,
    # base_nf=32, spatial=16x16.
    N, in_nf, cond_nf, base_nf, H, W = 2, 4, 4, 32, 16, 16

    key = jax.random.PRNGKey(0)
    k_x, k_c, k_p = jax.random.split(key, 3)
    x = jax.random.normal(k_x, (N, in_nf, H, W), jnp.float32)
    cond = jax.random.normal(k_c, (N, cond_nf, H, W), jnp.float32)
    params = init_gfm_params(k_p, cond_nf, in_nf, base_nf)

    gfm_jit = jax.jit(gfm_forward)
    out = jax.block_until_ready(gfm_jit(x, cond, params))

    ref = gfm_reference(x, cond, params)
    assert out.shape == (N, base_nf, H, W)
    assert jnp.allclose(out, ref, atol=1e-4, rtol=1e-4), "mismatch vs reference"

    print("KERNEL_OK")
</pallas_src>

<mosaic_0001>
module attributes {stable_mosaic.version = 11 : i64} {
  func.func @_gfm_kernel(%arg0: i32, %arg1: i32, %arg2: memref<1x4x256xf32, #tpu.memory_space<vmem>>, %arg3: memref<1x4x256xf32, #tpu.memory_space<vmem>>, %arg4: memref<32x4xf32, #tpu.memory_space<vmem>>, %arg5: memref<64x4xf32, #tpu.memory_space<vmem>>, %arg6: memref<96x1xf32, #tpu.memory_space<vmem>>, %arg7: memref<1x32x256xf32, #tpu.memory_space<vmem>>) attributes {dimension_semantics = [#tpu.dimension_semantics<parallel>, #tpu.dimension_semantics<parallel>], iteration_bounds = array<i64: 2, 1>, scalar_prefetch = 0 : i64, scratch_operands = 0 : i64, tpu.core_type = #tpu.core_type<tc>, window_params = [{transform_indices = @transform_0, window_bounds = array<i64: 1, 4, 256>}, {transform_indices = @transform_1, window_bounds = array<i64: 1, 4, 256>}, {pipeline_mode = #tpu.pipeline_mode<synchronous>, transform_indices = @transform_2, window_bounds = array<i64: 32, 4>}, {pipeline_mode = #tpu.pipeline_mode<synchronous>, transform_indices = @transform_3, window_bounds = array<i64: 64, 4>}, {pipeline_mode = #tpu.pipeline_mode<synchronous>, transform_indices = @transform_4, window_bounds = array<i64: 96, 1>}, {transform_indices = @transform_5, window_bounds = array<i64: 1, 32, 256>}]} {
    %c0 = arith.constant 0 : index
    %c0_0 = arith.constant 0 : index
    %0 = vector.load %arg4[%c0, %c0_0] : memref<32x4xf32, #tpu.memory_space<vmem>>, vector<32x4xf32>
    %c0_1 = arith.constant 0 : index
    %c0_2 = arith.constant 0 : index
    %c0_3 = arith.constant 0 : index
    %1 = vector.load %arg2[%c0_1, %c0_2, %c0_3] : memref<1x4x256xf32, #tpu.memory_space<vmem>>, vector<1x4x256xf32>
    %2 = vector.shape_cast %1 : vector<1x4x256xf32> to vector<4x256xf32>
    %cst = arith.constant dense<0.000000e+00> : vector<32x256xf32>
    %3 = tpu.matmul %0, %2, %cst {dimension_numbers = #tpu.dot_dimension_numbers<[1], [0], [0], [1], [0, 0, 1, 1], [], []>} : vector<32x4xf32>, vector<4x256xf32>, vector<32x256xf32> -> vector<32x256xf32>
    %c0_4 = arith.constant 0 : index
    %c0_5 = arith.constant 0 : index
    %4 = vector.load %arg6[%c0_4, %c0_5] : memref<96x1xf32, #tpu.memory_space<vmem>>, vector<32x1xf32>
    %5 = vector.broadcast %4 : vector<32x1xf32> to vector<32x256xf32>
    %6 = arith.addf %3, %5 : vector<32x256xf32>
    %c0_6 = arith.constant 0 : index
    %c0_7 = arith.constant 0 : index
    %7 = vector.load %arg5[%c0_6, %c0_7] : memref<64x4xf32, #tpu.memory_space<vmem>>, vector<64x4xf32>
    %c0_8 = arith.constant 0 : index
    %c0_9 = arith.constant 0 : index
    %c0_10 = arith.constant 0 : index
    %8 = vector.load %arg3[%c0_8, %c0_9, %c0_10] : memref<1x4x256xf32, #tpu.memory_space<vmem>>, vector<1x4x256xf32>
    %9 = vector.shape_cast %8 : vector<1x4x256xf32> to vector<4x256xf32>
    %cst_11 = arith.constant dense<0.000000e+00> : vector<64x256xf32>
    %10 = tpu.matmul %7, %9, %cst_11 {dimension_numbers = #tpu.dot_dimension_numbers<[1], [0], [0], [1], [0, 0, 1, 1], [], []>} : vector<64x4xf32>, vector<4x256xf32>, vector<64x256xf32> -> vector<64x256xf32>
    %11 = vector.extract_strided_slice %10 {offsets = [0, 0], sizes = [32, 256], strides = [1, 1]} : vector<64x256xf32> to vector<32x256xf32>
    %c32 = arith.constant 32 : index
    %c0_12 = arith.constant 0 : index
    %12 = vector.load %arg6[%c32, %c0_12] : memref<96x1xf32, #tpu.memory_space<vmem>>, vector<32x1xf32>
    %13 = vector.broadcast %12 : vector<32x1xf32> to vector<32x256xf32>
    %14 = arith.addf %11, %13 : vector<32x256xf32>
    %15 = vector.extract_strided_slice %10 {offsets = [32, 0], sizes = [32, 256], strides = [1, 1]} : vector<64x256xf32> to vector<32x256xf32>
    %c64 = arith.constant 64 : index
    %c0_13 = arith.constant 0 : index
    %16 = vector.load %arg6[%c64, %c0_13] : memref<96x1xf32, #tpu.memory_space<vmem>>, vector<32x1xf32>
    %17 = vector.broadcast %16 : vector<32x1xf32> to vector<32x256xf32>
    %18 = arith.addf %15, %17 : vector<32x256xf32>
    %19 = arith.mulf %6, %14 : vector<32x256xf32>
    %20 = arith.addf %19, %18 : vector<32x256xf32>
    %cst_14 = arith.constant 0.000000e+00 : f32
    %21 = vector.broadcast %cst_14 : f32 to vector<32x256xf32>
    %22 = arith.maximumf %20, %21 : vector<32x256xf32>
    %c0_15 = arith.constant 0 : index
    %c0_16 = arith.constant 0 : index
    %c0_17 = arith.constant 0 : index
    %23 = vector.load %arg7[%c0_15, %c0_16, %c0_17] : memref<1x32x256xf32, #tpu.memory_space<vmem>>, vector<1x32x256xf32>
    %24 = vector.shape_cast %23 : vector<1x32x256xf32> to vector<32x256xf32>
    %25 = vector.shape_cast %22 : vector<32x256xf32> to vector<1x32x256xf32>
    tpu.vector_store %arg7[%c0_15, %c0_16, %c0_17], %25 {strides = array<i32>} : memref<1x32x256xf32, #tpu.memory_space<vmem>>, vector<1x32x256xf32>,
    return
  }
  func.func @transform_0(%arg0: i32, %arg1: i32) -> (i32, i32, i32) {
    %c0_i32 = arith.constant 0 : i32
    %c0_i32_0 = arith.constant 0 : i32
    return %arg0, %c0_i32, %arg1 : i32, i32, i32
  }
  func.func @transform_1(%arg0: i32, %arg1: i32) -> (i32, i32, i32) {
    %c0_i32 = arith.constant 0 : i32
    %c0_i32_0 = arith.constant 0 : i32
    return %arg0, %c0_i32, %arg1 : i32, i32, i32
  }
  func.func @transform_2(%arg0: i32, %arg1: i32) -> (i32, i32) {
    %c0_i32 = arith.constant 0 : i32
    %c0_i32_0 = arith.constant 0 : i32
    %c0_i32_1 = arith.constant 0 : i32
    return %c0_i32, %c0_i32_0 : i32, i32
  }
  func.func @transform_3(%arg0: i32, %arg1: i32) -> (i32, i32) {
    %c0_i32 = arith.constant 0 : i32
    %c0_i32_0 = arith.constant 0 : i32
    %c0_i32_1 = arith.constant 0 : i32
    return %c0_i32, %c0_i32_0 : i32, i32
  }
  func.func @transform_4(%arg0: i32, %arg1: i32) -> (i32, i32) {
    %c0_i32 = arith.constant 0 : i32
    %c0_i32_0 = arith.constant 0 : i32
    %c0_i32_1 = arith.constant 0 : i32
    return %c0_i32, %c0_i32_0 : i32, i32
  }
  func.func @transform_5(%arg0: i32, %arg1: i32) -> (i32, i32, i32) {
    %c0_i32 = arith.constant 0 : i32
    %c0_i32_0 = arith.constant 0 : i32
    return %arg0, %c0_i32, %arg1 : i32, i32, i32
  }
}

</mosaic_0001>

<bundles_post_ra>
// kernel: gfm_forward.1
= control target key start
LH: loop header
LB: loop body
LE: loop exit
PB: predicated region body
PF: predicated region fallthrough
CT: control target
= control target key end

     0   :  { %s862_s18 = smov 0   ;;  %s864_s19 = smov 0   ;;  %s1020_s0 = inlined_call_operand.vmem [shape: f32[2,4,256], index: 0, kind: input, shape index: {}]   ;;  %s1021_s1 = inlined_call_operand.vmem [shape: f32[2,4,256], index: 1, kind: input, shape index: {}]   ;;  %s1022_s2 = inlined_call_operand.vmem [shape: f32[32,4], index: 2, kind: input, shape index: {}]   ;;  %s1023_s3 = inlined_call_operand.vmem [shape: f32[64,4], index: 3, kind: input, shape index: {}]   ;;  %s1024_s4 = inlined_call_operand.vmem [shape: f32[96,1], index: 4, kind: input, shape index: {}]   ;;  %s1025_s5 = inlined_call_operand.vmem [shape: f32[2,32,256], index: 5, kind: output, shape index: {}]  }
   0x1   :  { %s866_s20 = smov 0  }
   0x2 LB: > { %s27_s21 = sadd.s32 1, %s825_s19  ;;  %p737_p0 = scmp.ge.s32.totalorder %s829_s20, 1  ;;  %s829_s20 = sphi %s866_s20, %s15_s20   ;;  %s825_s19 = sphi %s864_s19, %s1027_s19   ;;  %s821_s18 = sphi %s862_s18, %s1026_s18  }
   0x3   : > { %p29_p1 = scmp.ge.s32.totalorder %s27_s21, 2  ;;  %p225_p2 = scmp.lt.s32.totalorder %s829_s20, 3 }
   0x5   : > { %s1029_s21 = smov (%p29_p1, %s27_s21), 0  ;;  %p226_p3 = pnand %p737_p0, %p225_p2 }
   0x6   : > { %p271_p4 = scmp.lt.s32.totalorder (!%p226_p3), %s821_s18, 1 }
   0x7   : > { %229 = sbr.rel (%p226_p3) target bundleno = 214 (0xd6), region = 40 }
   0xc   : > { %v831_v0 = vmov 0   ;;  %v305_v1 = vld [vmem:[%s1024_s4] sm:$0xff]  ;;  %s1031_s18 = smov (!%p271_p4, %s821_s18), 1  ;;  %v307_v2 = vld [vmem:[%s1024_s4 + $0x10] sm:$0xff]  ;;  %v306_v4 = vld [vmem:[%s1024_s4 + $0x8] sm:$0xff]  ;;  %vm346_vm0 = vcmask 1043456  }
   0xd   : > { %804 = vset.pattern.permute.xlu0 %v831_v0  ;;  %805 = vset.pattern.permute.xlu1 %v831_v0  ;;  %s774_s26 = sshll.u32 %s1031_s18, 3  ;;  %v308_v5 = vld [vmem:[%s1024_s4 + $0x18] sm:$0xff]  ;;  %v300_v7 = vld [vmem:[%s1022_s2] sm:$0xff]  ;;  %vm333_vm1 = vcmask 31744   ;;  %v534_v10 = vld [vmem:[%s1024_s4 + $0x30] sm:$0xff]  ;;  %s776_s10 = sshll.u32 %s1031_s18, 6 }
   0xe   : > { %311 = vperm.xlu0 %804, %v305_v1   ;;  %806 = vset.pattern.permute.xlu2 %v831_v0  ;;  %s278_s29 = scalar_lea.vmem %s1020_s0, %s774_s26  ;;  %s288_s9 = scalar_lea.vmem %s1021_s1, %s774_s26  ;;  %v535_v11 = vld [vmem:[%s1024_s4 + $0x38] sm:$0xff]  ;;  %v301_v12 = vld [vmem:[%s1022_s2 + $0x8] sm:$0xff]  ;;  %v411_v13 = vld [vmem:[%s1023_s3 + $0x10] sm:$0xff] }
   0xf   : > { %321 = vperm.xlu1 %805, %v307_v2   ;;  %v304_v3 = vld [vmem:[%s278_s29] sm:$0xff]  ;;  %v566_v17 = vld [vmem:[%s1024_s4 + $0x50] sm:$0xff]  ;;  %v565_v18 = vld [vmem:[%s1024_s4 + $0x48] sm:$0xff]  ;;  %s999_s13 = scalar_lea.vmem %s1025_s5, %s776_s10 }
  0x10   : > { %330 = vst [vmem:[#allocation1] ss:$2 sm:$0xff] %v304_v3  ;;  %v417_v6 = vld [vmem:[%s288_s9] sm:$0xff]  ;;  %v302_v19 = vld [vmem:[%s1022_s2 + $0x10] sm:$0xff]  ;;  %v412_v20 = vld [vmem:[%s1023_s3 + $0x18] sm:$0xff] }
  0x11   : > { %v532_v16 = vld [vmem:[%s1024_s4 + $0x20] sm:$0xff]  ;;  %v533_v21 = vld [vmem:[%s1024_s4 + $0x28] sm:$0xff]  ;;  %v303_v22 = vld [vmem:[%s1022_s2 + $0x18] sm:$0xff] }
  0x12   : > { %538 = vperm.xlu2 %806, %v532_v16   ;;  %v413_v23 = vld [vmem:[%s1023_s3 + $0x20] sm:$0xff]  ;;  %v414_v26 = vld [vmem:[%s1023_s3 + $0x28] sm:$0xff]  ;;  %v567_v27 = vld [vmem:[%s1024_s4 + $0x58] sm:$0xff] }
  0x13   : > { %v564_v24 = vld [vmem:[%s1024_s4 + $0x40] sm:$0xff]  ;;  %v410_v28 = vld [vmem:[%s1023_s3 + $0x8] sm:$0xff]  ;;  %v415_v29 = vld [vmem:[%s1023_s3 + $0x30] sm:$0xff] }
  0x14   : > { %v409_v25 = vld [vmem:[%s1023_s3] sm:$0xff]  ;;  %v416_v30 = vld [vmem:[%s1023_s3 + $0x38] sm:$0xff] }
  0x16   : > { %316 = vperm.xlu0 %804, %v306_v4  }
  0x17   : > { %326 = vperm.xlu1 %805, %v308_v5   ;;  %v331_v8 = vld.sshfl [vmem:[#allocation1] sm:$0xff pattern:$0x75316420]  ;;  %v332_v9 = vld.sshfl [vmem:[#allocation1 + $0x8] sm:$0xff pattern:$0x75316420] }
  0x18   : > { %744 = vmatpush.msk.msra.mxu0 %vm346_vm0, %v331_v8  ;;  %749 = vmatpush.msk.msra.mxu1 %vm346_vm0, %v332_v9  ;;  %419 = vst [vmem:[#allocation1] ss:$2 sm:$0xff] %v417_v6 }
  0x19   : > { %745 = vmatmul.msk.f32.vlgmr.msra.gmra.mxu0 %vm333_vm1, %v300_v7  ;;  %750 = vmatmul.msk.f32.vlgmr.msra.gmra.mxu1 %vm333_vm1, %v300_v7 }
  0x1a   : > { %543 = vperm.xlu2 %806, %v533_v21  }
  0x1e   : > { %548 = vperm.xlu0 %804, %v534_v10  }
  0x1f   : > { %553 = vperm.xlu1 %805, %v535_v11   ;;  %v420_v14 = vld.sshfl [vmem:[#allocation1] sm:$0xff pattern:$0x75316420]  ;;  %v421_v15 = vld.sshfl [vmem:[#allocation1 + $0x8] sm:$0xff pattern:$0x75316420] }
  0x20   : > { %777 = vmatpush.msk.msra.mxu2 %vm346_vm0, %v420_v14  ;;  %778 = vmatpush.msk.msra.mxu3 %vm346_vm0, %v421_v15 }
  0x21   : > { %746 = vmatmul.msk.f32.gmra.mxu0 %vm333_vm1, %v301_v12  ;;  %751 = vmatmul.msk.f32.gmra.mxu1 %vm333_vm1, %v301_v12 }
  0x22   : > { %757 = vmatmul.msk.f32.vlgmr.msra.gmra.mxu2 %vm333_vm1, %v411_v13  ;;  %766 = vmatmul.msk.f32.vlgmr.msra.gmra.mxu3 %vm333_vm1, %v411_v13 }
  0x23   : > { %754 = vmatpush.msk.msrb.mxu0 %vm346_vm0, %v420_v14  ;;  %763 = vmatpush.msk.msrb.mxu1 %vm346_vm0, %v421_v15 }
  0x24   : > { %570 = vperm.xlu2 %806, %v564_v24  }
  0x26   : > { %575 = vperm.xlu0 %804, %v565_v18  }
  0x27   : > { %580 = vperm.xlu1 %805, %v566_v17  }
  0x29   : > { %747 = vmatmul.msk.f32.gmra.mxu0 %vm333_vm1, %v302_v19  ;;  %752 = vmatmul.msk.f32.gmra.mxu1 %vm333_vm1, %v302_v19 }
  0x2a   : > { %758 = vmatmul.msk.f32.gmra.mxu2 %vm333_vm1, %v412_v20  ;;  %767 = vmatmul.msk.f32.gmra.mxu3 %vm333_vm1, %v412_v20 }
  0x2c   : > { %585 = vperm.xlu2 %806, %v567_v27  }
  0x31   : > { %748 = vmatmul.msk.f32.gmra.mxu0 %vm333_vm1, %v303_v22  ;;  %753 = vmatmul.msk.f32.gmra.mxu1 %vm333_vm1, %v303_v22 }
  0x32   : > { %759 = vmatmul.msk.f32.gmra.mxu2 %vm333_vm1, %v413_v23  ;;  %768 = vmatmul.msk.f32.gmra.mxu3 %vm333_vm1, %v413_v23 }
  0x39   : > { %755 = vmatmul.msk.f32.vlgmr.msrb.gmra.mxu0 %vm333_vm1, %v409_v25  ;;  %764 = vmatmul.msk.f32.vlgmr.msrb.gmra.mxu1 %vm333_vm1, %v409_v25 }
  0x3a   : > { %760 = vmatmul.msk.f32.gmra.mxu2 %vm333_vm1, %v414_v26  ;;  %769 = vmatmul.msk.f32.gmra.mxu3 %vm333_vm1, %v414_v26 }
  0x41   : > { %756 = vmatmul.msk.f32.gmra.mxu0 %vm333_vm1, %v410_v28  ;;  %765 = vmatmul.msk.f32.gmra.mxu1 %vm333_vm1, %v410_v28 }
  0x42   : > { %761 = vmatmul.msk.f32.gmra.mxu2 %vm333_vm1, %v415_v29  ;;  %770 = vmatmul.msk.f32.gmra.mxu3 %vm333_vm1, %v415_v29 }
  0x4a   : > { %762 = vmatmul.msk.f32.gmra.mxu2 %vm333_vm1, %v416_v30  ;;  %771 = vmatmul.msk.f32.gmra.mxu3 %vm333_vm1, %v416_v30 }
  0x6c   : > { %v539_v36 = vpop.permute.xlu2 %538 }
  0x74   : > { %v544_v43 = vpop.permute.xlu2 %543 }
  0x7e   : > { %v571_v58 = vpop.permute.xlu2 %570 }
  0x80   : > { %v312_v35 = vpop.permute.xlu0 %311 }
  0x81   : > { %v322_v37 = vpop.permute.xlu1 %321 }
  0x88   : > { %v317_v42 = vpop.permute.xlu0 %316 }
  0x89   : > { %v327_v48 = vpop.permute.xlu1 %326 }
  0x90   : > { %v549_v57 = vpop.permute.xlu0 %548 }
  0x91   : > { %v554_v63 = vpop.permute.xlu1 %553 }
  0x96   : > { %v368_v31 = vpop.f32.mrf.mxu0  ;;  %v397_v32 = vpop.f32.mrf.mxu1 }
  0x97   : > { %v369_v53 = vadd.f32 %v368_v31, %v312_v35  ;;  %v398_v54 = vadd.f32 %v397_v32, %v312_v35 }
  0x98   : > { %v576_v12 = vpop.permute.xlu0 %575 }
  0x99   : > { %v581_v23 = vpop.permute.xlu1 %580 }
  0x9e   : > { %v371_v33 = vpop.f32.mrf.mxu0  ;;  %v400_v34 = vpop.f32.mrf.mxu1 }
  0x9f   : > { %v372_v8 = vadd.f32 %v371_v33, %v317_v42  ;;  %v401_v9 = vadd.f32 %v400_v34, %v317_v42 }
  0xa5   : > { %v473_v38 = vpop.f32.mrf.mxu2  ;;  %v514_v39 = vpop.f32.mrf.mxu3 }
  0xa6   : > { %v374_v40 = vpop.f32.mrf.mxu0  ;;  %v403_v41 = vpop.f32.mrf.mxu1  ;;  %v560_v21 = vadd.f32 %v549_v57, %v473_v38  ;;  %v561_v22 = vadd.f32 %v549_v57, %v514_v39 }
  0xa7   : > { %v375_v17 = vadd.f32 %v374_v40, %v322_v37  ;;  %v404_v18 = vadd.f32 %v403_v41, %v322_v37  ;;  %v586_v40 = vpop.permute.xlu2 %585 }
  0xa9   : > { %v600_v28 = vmul.f32 %v560_v21, %v375_v17  ;;  %v601_v29 = vmul.f32 %v561_v22, %v404_v18 }
  0xad   : > { %v991_v44 = vpop.f32.mrf.mxu2  ;;  %v993_v45 = vpop.f32.mrf.mxu3 }
  0xae   : > { %v377_v46 = vpop.f32.mrf.mxu0  ;;  %v406_v47 = vpop.f32.mrf.mxu1  ;;  %v562_v38 = vadd.f32 %v554_v63, %v991_v44  ;;  %v563_v39 = vadd.f32 %v554_v63, %v993_v45 }
  0xaf   : > { %v378_v34 = vadd.f32 %v377_v46, %v327_v48  ;;  %v407_v35 = vadd.f32 %v406_v47, %v327_v48 }
  0xb5   : > { %v479_v49 = vpop.f32.mrf.mxu2  ;;  %v520_v50 = vpop.f32.mrf.mxu3 }
  0xb6   : > { %v467_v51 = vpop.f32.mrf.mxu0  ;;  %v508_v52 = vpop.f32.mrf.mxu1  ;;  %v588_v59 = vadd.f32 %v571_v58, %v479_v49  ;;  %v589_v60 = vadd.f32 %v571_v58, %v520_v50  ;;  %v603_v49 = vmul.f32 %v563_v39, %v407_v35 }
  0xb7   : > { %v556_v55 = vadd.f32 %v539_v36, %v467_v51  ;;  %v557_v56 = vadd.f32 %v539_v36, %v508_v52 }
  0xb9   : > { %v596_v61 = vmul.f32 %v556_v55, %v369_v53  ;;  %v597_v62 = vmul.f32 %v557_v56, %v398_v54 }
  0xbb   : > { %v604_v0 = vadd.f32 %v596_v61, %v588_v59  ;;  %v605_v1 = vadd.f32 %v597_v62, %v589_v60 }
  0xbd   : > { %v612_v2 = vmax.f32 %v604_v0, 0.0  ;;  %v613_v3 = vmax.f32 %v605_v1, 0.0  ;;  %v482_v4 = vpop.f32.mrf.mxu2  ;;  %v523_v5 = vpop.f32.mrf.mxu3 }
  0xbe   : > { %v470_v6 = vpop.f32.mrf.mxu0  ;;  %v511_v7 = vpop.f32.mrf.mxu1  ;;  %v590_v13 = vadd.f32 %v576_v12, %v482_v4  ;;  %v591_v14 = vadd.f32 %v576_v12, %v523_v5 }
  0xbf   : > { %620 = vst [vmem:[%s999_s13] sm:$0xff] %v612_v2  ;;  %v558_v10 = vadd.f32 %v544_v43, %v470_v6  ;;  %v559_v11 = vadd.f32 %v544_v43, %v511_v7  ;;  %v602_v43 = vmul.f32 %v562_v38, %v378_v34 }
  0xc0   : > { %621 = vst [vmem:[%s999_s13 + $0x8] sm:$0xff] %v613_v3 }
  0xc1   : > { %v598_v15 = vmul.f32 %v558_v10, %v372_v8  ;;  %v599_v16 = vmul.f32 %v559_v11, %v401_v9 }
  0xc3   : > { %v606_v19 = vadd.f32 %v598_v15, %v590_v13  ;;  %v607_v20 = vadd.f32 %v599_v16, %v591_v14 }
  0xc5   : > { %v614_v24 = vmax.f32 %v606_v19, 0.0  ;;  %v615_v25 = vmax.f32 %v607_v20, 0.0  ;;  %v485_v26 = vpop.f32.mrf.mxu2  ;;  %v526_v27 = vpop.f32.mrf.mxu3 }
  0xc6   : > { %v592_v30 = vadd.f32 %v581_v23, %v485_v26  ;;  %v593_v31 = vadd.f32 %v581_v23, %v526_v27 }
  0xc7   : > { %622 = vst [vmem:[%s999_s13 + $0x10] sm:$0xff] %v614_v24 }
  0xc8   : > { %623 = vst [vmem:[%s999_s13 + $0x18] sm:$0xff] %v615_v25  ;;  %v608_v32 = vadd.f32 %v600_v28, %v592_v30  ;;  %v609_v33 = vadd.f32 %v601_v29, %v593_v31 }
  0xca   : > { %v616_v36 = vmax.f32 %v608_v32, 0.0  ;;  %v617_v37 = vmax.f32 %v609_v33, 0.0 }
  0xcc   : > { %624 = vst [vmem:[%s999_s13 + $0x20] sm:$0xff] %v616_v36 }
  0xcd   : > { %625 = vst [vmem:[%s999_s13 + $0x28] sm:$0xff] %v617_v37  ;;  %v488_v41 = vpop.f32.mrf.mxu2  ;;  %v529_v42 = vpop.f32.mrf.mxu3 }
  0xce   : > { %v594_v50 = vadd.f32 %v586_v40, %v488_v41  ;;  %v595_v51 = vadd.f32 %v586_v40, %v529_v42 }
  0xd0   : > { %v610_v52 = vadd.f32 %v602_v43, %v594_v50  ;;  %v611_v46 = vadd.f32 %v603_v49, %v595_v51 }
  0xd2   : > { %v618_v47 = vmax.f32 %v610_v52, 0.0  ;;  %v619_v48 = vmax.f32 %v611_v46, 0.0 }
  0xd4   : > { %626 = vst [vmem:[%s999_s13 + $0x30] sm:$0xff] %v618_v47 }
  0xd5   : > { %627 = vst [vmem:[%s999_s13 + $0x38] sm:$0xff] %v619_v48 }
  0xd6 PF: > { %s15_s20 = sadd.s32 1, %s829_s20   ;;  %s1026_s18 = smov %s825_s19 }
  0xd7   : > { %p12_p5 = scmp.ge.s32.totalorder %s15_s20, 4   ;;  %s1027_s19 = smov %s1029_s21 }
  0xd9   :  { %14 = sbr.rel (!%p12_p5) target bundleno = 2 (0x2), region = 73 }

</bundles_post_ra>
